<compile_context>
chip_gen: v7x
topology: tpu7x:2x2x1
jax: 0.10.0
libtpu: 0.0.40
codegen_flags: <defaults>
</compile_context>

<pallas_src>
import jax
import jax.numpy as jnp
from jax.experimental import pallas as pl
from jax.experimental.pallas import tpu as pltpu


def _pooler_kernel(x_ref, w_ref, b_ref, o_ref):
    # x_ref : (B, H)        first-token activations (resident, compute dtype)
    # w_ref : (H, tn)       weight tile, (in, out) layout, streamed per step
    # b_ref : (grid_n, tn)  full bias (resident, f32); row j = bias tile j
    # o_ref : (B, tn)       pooled output tile
    j = pl.program_id(0)
    y = jnp.dot(x_ref[...], w_ref[...], preferred_element_type=jnp.float32)
    y = y + b_ref[pl.ds(j, 1), :]                   # (1, tn) broadcast over batch, f32
    o_ref[...] = jnp.tanh(y).astype(o_ref.dtype)    # EUP tanh in f32, cast on store


_DEFAULT_WEIGHT_BUDGET = 12 * 1024 * 1024  # double-buffered weight-stream cap


def _weight_vmem_budget():
    """Bytes allowed for the double-buffered weight stream.  Conservative so it
    fits the scoped VMEM default on v5e (16 MiB) and leaves room for the
    resident x/bias/output buffers on v7x (64 MiB physical, 32 MiB scoped)."""
    try:
        cap = int(pltpu.get_tpu_info().vmem_capacity_bytes)
        return min(max(cap // 8, 4 * 1024 * 1024), _DEFAULT_WEIGHT_BUDGET)
    except Exception:
        return _DEFAULT_WEIGHT_BUDGET


def _tensorcores_per_chip():
    """Best-effort TensorCore count (2 on v7x-class parts, else 1)."""
    try:
        dev = jax.devices()[0]
        n = getattr(dev, "num_cores", None)
        if n:
            return int(n)
        if "v7" in str(getattr(dev, "device_kind", "")).lower():
            return 2
    except Exception:
        pass
    return 1


def _pick_tn(H, weight_itemsize, *, min_tiles=1, budget=None):
    """Output-column tile width.

    Chooses a multiple of 128 that divides H exactly (lane-dense unmasked
    stores, no ragged tile), the largest whose double-buffered (H, tn) weight
    tile fits the VMEM budget, and small enough to give at least `min_tiles`
    grid steps on multi-TC chips.  If H is not a multiple of 128 we fall back
    to tn == H (a full-extent block satisfies the (8, 128) rule)."""
    if budget is None:
        budget = _weight_vmem_budget()
    if H % 128 != 0:
        return H
    cands = [c for c in range(128, H + 1, 128) if H % c == 0]
    fits = [c for c in cands if 2 * c * H * weight_itemsize <= budget] or [128]
    split = [c for c in fits if H // c >= min_tiles] or fits
    return max(split)


def prepare_pooler_params(weight, bias, *, compute_dtype=jnp.bfloat16):
    """One-time (model-load) parameter prep.

    weight: (H_out, H_in) PyTorch nn.Linear layout.
    Returns (w_kn, b): w_kn = weight.T in `compute_dtype` (standard (K, N) MXU
    contraction, half the HBM bytes when bf16); bias kept in f32."""
    w_kn = jnp.asarray(weight).T.astype(compute_dtype)
    b = jnp.asarray(bias).astype(jnp.float32)
    return w_kn, b


def electra_pooler(hidden_states, w_kn, bias, *, tn=None):
    """hidden_states: (B, S, H); w_kn: (H_in, H_out) prepared weight
    (see prepare_pooler_params); bias: (H,) f32."""
    B, S, H = hidden_states.shape
    assert w_kn.shape == (H, H) and bias.shape == (H,)

    # Tiny wrapper glue: first-token slice + cast to the weight compute dtype
    # (B*H elements, negligible next to the H*H weight stream).
    x = hidden_states[:, 0, :].astype(w_kn.dtype)

    if tn is None:
        tn = _pick_tn(H, jnp.dtype(w_kn.dtype).itemsize,
                      min_tiles=_tensorcores_per_chip())
    grid_n = pl.cdiv(H, tn)

    # Full bias laid out as one row per output tile so it can stay resident in
    # VMEM and be sublane-indexed by program_id (no per-step bias DMA).
    if H % tn == 0:
        b_tiles = bias.reshape(grid_n, tn)
    else:  # only reachable with a user-supplied ragged tn
        b_tiles = jnp.pad(bias, (0, grid_n * tn - H)).reshape(grid_n, tn)

    return pl.pallas_call(
        _pooler_kernel,
        out_shape=jax.ShapeDtypeStruct((B, H), hidden_states.dtype),
        grid_spec=pl.GridSpec(
            grid=(grid_n,),
            in_specs=[
                # x: constant block index -> DMAed once, resident across grid.
                pl.BlockSpec((B, H), lambda j: (0, 0)),
                # weight: (H, tn) tiles streamed along N, double-buffered.
                pl.BlockSpec((H, tn), lambda j: (0, j)),
                # bias: whole (grid_n, tn) array resident across the grid.
                pl.BlockSpec((grid_n, tn), lambda j: (0, 0)),
            ],
            out_specs=pl.BlockSpec((B, tn), lambda j: (0, j)),
        ),
        compiler_params=pltpu.CompilerParams(
            # Independent output-column tiles: shard the weight stream across
            # both TensorCores on v7x (no-op on single-TC v5e/v6e).
            dimension_semantics=("parallel",),
        ),
    )(x, w_kn, b_tiles)


if __name__ == "__main__":
    # Small shapes consistent with the module: batch=2, seq=8, hidden=32.
    B, S, H = 2, 8, 32
    key = jax.random.PRNGKey(0)
    k_x, k_w, k_b = jax.random.split(key, 3)

    hidden_states = jax.random.normal(k_x, (B, S, H), dtype=jnp.float32)
    # nn.Linear parameters in PyTorch (out_features, in_features) layout.
    weight = jax.random.normal(k_w, (H, H), dtype=jnp.float32) * 0.02
    bias = jax.random.normal(k_b, (H,), dtype=jnp.float32) * 0.02

    # One-time parameter prep (transpose + bf16 cast), then the fused kernel.
    w_kn, b = prepare_pooler_params(weight, bias)
    out = electra_pooler(hidden_states, w_kn, b)
    out = jax.block_until_ready(out)
    assert out.shape == (B, H)

    first = hidden_states[:, 0, :]
    # Reference at matched precision (bf16 inputs, f32 accumulate, f32 tanh).
    ref_bf16 = jnp.tanh(
        jnp.dot(first.astype(jnp.bfloat16), w_kn,
                preferred_element_type=jnp.float32) + b)
    # Full-f32 PyTorch-equivalent reference (loose tol: bf16 weight stream).
    ref_f32 = jnp.tanh(first @ weight.T + bias)

    assert jnp.allclose(out, ref_bf16, atol=1e-4, rtol=1e-4), \
        float(jnp.max(jnp.abs(out - ref_bf16)))
    assert jnp.allclose(out, ref_f32, atol=2e-2, rtol=2e-2), \
        float(jnp.max(jnp.abs(out - ref_f32)))

    print("KERNEL_OK")
</pallas_src>

<mosaic_0001>
module attributes {stable_mosaic.version = 11 : i64} {
  func.func @_pooler_kernel(%arg0: i32, %arg1: memref<2x32xbf16, #tpu.memory_space<vmem>>, %arg2: memref<32x32xbf16, #tpu.memory_space<vmem>>, %arg3: memref<1x32xf32, #tpu.memory_space<vmem>>, %arg4: memref<2x32xf32, #tpu.memory_space<vmem>>) attributes {dimension_semantics = [#tpu.dimension_semantics<parallel>], iteration_bounds = array<i64: 1>, scalar_prefetch = 0 : i64, scratch_operands = 0 : i64, tpu.core_type = #tpu.core_type<tc>, window_params = [{pipeline_mode = #tpu.pipeline_mode<synchronous>, transform_indices = @transform_0, window_bounds = array<i64: 2, 32>}, {transform_indices = @transform_1, window_bounds = array<i64: 32, 32>}, {pipeline_mode = #tpu.pipeline_mode<synchronous>, transform_indices = @transform_2, window_bounds = array<i64: 1, 32>}, {transform_indices = @transform_3, window_bounds = array<i64: 2, 32>}]} {
    %c0 = arith.constant 0 : index
    %c0_0 = arith.constant 0 : index
    %0 = vector.load %arg1[%c0, %c0_0] : memref<2x32xbf16, #tpu.memory_space<vmem>>, vector<2x32xbf16>
    %c0_1 = arith.constant 0 : index
    %c0_2 = arith.constant 0 : index
    %1 = vector.load %arg2[%c0_1, %c0_2] : memref<32x32xbf16, #tpu.memory_space<vmem>>, vector<32x32xbf16>
    %cst = arith.constant dense<0.000000e+00> : vector<2x32xf32>
    %2 = tpu.matmul %0, %1, %cst {dimension_numbers = #tpu.dot_dimension_numbers<[1], [0], [0], [1], [0, 0, 1, 1], [], []>} : vector<2x32xbf16>, vector<32x32xbf16>, vector<2x32xf32> -> vector<2x32xf32>
    %3 = arith.index_cast %arg0 : i32 to index
    %c0_3 = arith.constant 0 : index
    %4 = vector.load %arg3[%3, %c0_3] : memref<1x32xf32, #tpu.memory_space<vmem>>, vector<1x32xf32>
    %5 = vector.broadcast %4 : vector<1x32xf32> to vector<2x32xf32>
    %6 = arith.addf %2, %5 : vector<2x32xf32>
    %7 = math.tanh %6 : vector<2x32xf32>
    %c0_4 = arith.constant 0 : index
    %c0_5 = arith.constant 0 : index
    %8 = vector.load %arg4[%c0_4, %c0_5] : memref<2x32xf32, #tpu.memory_space<vmem>>, vector<2x32xf32>
    tpu.vector_store %arg4[%c0_4, %c0_5], %7 {strides = array<i32>} : memref<2x32xf32, #tpu.memory_space<vmem>>, vector<2x32xf32>,
    return
  }
  func.func @transform_0(%arg0: i32) -> (i32, i32) {
    %c0_i32 = arith.constant 0 : i32
    %c0_i32_0 = arith.constant 0 : i32
    %c0_i32_1 = arith.constant 0 : i32
    return %c0_i32, %c0_i32_0 : i32, i32
  }
  func.func @transform_1(%arg0: i32) -> (i32, i32) {
    %c0_i32 = arith.constant 0 : i32
    %c0_i32_0 = arith.constant 0 : i32
    return %c0_i32, %arg0 : i32, i32
  }
  func.func @transform_2(%arg0: i32) -> (i32, i32) {
    %c0_i32 = arith.constant 0 : i32
    %c0_i32_0 = arith.constant 0 : i32
    %c0_i32_1 = arith.constant 0 : i32
    return %c0_i32, %c0_i32_0 : i32, i32
  }
  func.func @transform_3(%arg0: i32) -> (i32, i32) {
    %c0_i32 = arith.constant 0 : i32
    %c0_i32_0 = arith.constant 0 : i32
    return %c0_i32, %arg0 : i32, i32
  }
}

</mosaic_0001>

<bundles_post_ra>
// kernel: tpu_custom_call.1
= control target key start
LH: loop header
LB: loop body
LE: loop exit
PB: predicated region body
PF: predicated region fallthrough
CT: control target
= control target key end

     0   :  { %8 = vsyncpa [#allocation3], 0  ;;  %s300_s0 = inlined_call_operand.hbm [shape: bf16[2,32], index: 0, kind: input, shape index: {}]   ;;  %s301_s1 = inlined_call_operand.hbm [shape: bf16[32,32], index: 1, kind: input, shape index: {}]   ;;  %s302_s2 = inlined_call_operand.vmem [shape: f32[1,32], index: 2, kind: input, shape index: {}]   ;;  %s303_s3 = inlined_call_operand.hbm [shape: f32[2,32], index: 3, kind: output, shape index: {}]  }
   0x1   :  { %9 = vsyncpa [#allocation6], 0 }
   0x2   :  { %10 = vsyncpa [#allocation4], 0  ;;  %s227_s12 = smov [#allocation2]   ;;  %s228_s14 = smov [#allocation5]  }
   0x3   :  { %s17_s13 = sshll.u32 %s227_s12, 4  ;;  %s26_s15 = sshll.u32 %s228_s14, 4  ;;  %s18_s13 = int_to_ptr.vmem [resolvable:$true] %s17_s13  ;;  %s254_s15 = int_to_ptr.vmem [resolvable:$true] %s26_s15 }
   0x4   :  { %s155_s18 = scalar_lea.hbm %s300_s0, 16 }
   0x5   :  { %p156_p0 = scmp.ne.s32.totalorder %s300_s0, %s155_s18  ;;  %p159_p1 = scmp.lt.u32.totalorder %s155_s18, %s300_s0 }
   0x7   :  { %p161_p2 = pnand %p159_p1, %p156_p0 }
   0x9   :  { %164 = shalt.err (!%p161_p2)
}
   0xa   :  { %s165_s23 = scalar_lea.vmem %s18_s13, 16  ;;  %s169_s24 = scalar_lea.vmem %s18_s13, 32 }
   0xb   :  { %p166_p3 = scmp.ne.s32.totalorder %s18_s13, %s165_s23  ;;  %p170_p4 = scmp.lt.s32.totalorder %s18_s13, %s18_s13 }
   0xc   :  { %p171_p5 = scmp.lt.s32.totalorder %s169_s24, %s165_s23 }
   0xe   :  { %p172_p6 = por %p171_p5, %p170_p4 }
  0x10   :  { %p173_p7 = pnand %p172_p6, %p166_p3 }
  0x12   :  { %176 = shalt.err (!%p173_p7)
}
  0x13   :  { %20 = dma.hbm_to_vmem [thread:$0]  %s300_s0, 16, %s18_s13, [#allocation3]  }
  0x14   :  { %s177_s29 = scalar_lea.hbm %s301_s1, 256 }
  0x15   :  { %p178_p8 = scmp.ne.s32.totalorder %s301_s1, %s177_s29  ;;  %p181_p9 = scmp.lt.u32.totalorder %s177_s29, %s301_s1 }
  0x17   :  { %p183_p10 = pnand %p181_p9, %p178_p8 }
  0x19   :  { %186 = shalt.err (!%p183_p10)
}
  0x1a   :  { %s187_s7 = scalar_lea.vmem %s254_s15, 256  ;;  %p192_p12 = scmp.lt.s32.totalorder %s254_s15, %s254_s15 }
  0x1b   :  { %p188_p11 = scmp.ne.s32.totalorder %s254_s15, %s187_s7  ;;  %p193_p13 = scmp.lt.s32.totalorder %s187_s7, %s187_s7 }
  0x1d   :  { %p194_p0 = por %p193_p13, %p192_p12 }
  0x1f   :  { %p195_p1 = pnand %p194_p0, %p188_p11 }
  0x21   :  { %198 = shalt.err (!%p195_p1)
}
  0x22   :  { %s229_s0 = smov 64   ;;  %s230_s8 = smov 4  }
  0x23   :  { %32 = dma.hbm_to_vmem [thread:$0]  %s301_s1, 256, %s254_s15, [#allocation6], %s229_s0, %s229_s0, %s230_s8  }
  0x24   :  { %221 = dma.done.wait [#allocation3], 16  }
  0x25   :  { %222 = vsyncadd [#allocation3], 4294967280 }
  0x26   :  { %223 = dma.done.wait [#allocation6], 256  }
  0x27   :  { %224 = vsyncadd [#allocation6], 4294967040  ;;  %v231_v0 = vmov 0.0   ;;  %vm232_vm0 = vmmov 0   ;;  %v151_v1 = vld [vmem:[#allocation5] sm:$0xff]   ;;  %v152_v2 = vld [vmem:[#allocation5 + $0x8] sm:$0xff]  }
  0x28   :  { %136 = vmatprep.subr.bf16.mxu0 %v231_v0  ;;  %140 = vmatprep.mubr.msk.bf16.mxu0 %vm232_vm0, %v231_v0  ;;  %v42_v3 = vld [vmem:[#allocation2] sm:$0x1]  ;;  %vm66_vm1 = vcmask 261120   ;;  %s233_s1 = smov [#allocation7]   ;;  %vm111_vm2 = vcmask 254976  }
  0x29   :  { %137 = vmatpush3.bf16.msra.mxu0 %v151_v1  ;;  %v129_v4 = vld [vmem:[%s302_s2] ss:$0 sm:$0xff]  ;;  %s119_s13 = sshll.u32 %s233_s1, 4  ;;  %s120_s13 = int_to_ptr.vmem [resolvable:$true] %s119_s13 }
  0x2a   :  { %138 = vmatprep.subr.bf16.mxu0 %v231_v0  ;;  %s199_s14 = scalar_lea.vmem %s120_s13, 32  ;;  %p204_p3 = scmp.lt.s32.totalorder %s120_s13, %s120_s13 }
  0x2b   :  { %p200_p2 = scmp.ne.s32.totalorder %s120_s13, %s199_s14  ;;  %p205_p4 = scmp.lt.s32.totalorder %s199_s14, %s199_s14 }
  0x2d   :  { %139 = vmatpush3.bf16.msra.mxu0 %v152_v2  ;;  %p206_p5 = por %p205_p4, %p204_p3 }
  0x2f   :  { %p207_p6 = pnand %p206_p5, %p200_p2 }
  0x30   :  { %141 = vmatmul.mubr.msk.bf16.vlgmr.msra.gmra.mrb[0].mxu0 %vm66_vm1, %v42_v3 }
 0x103   :  { %v104_v5 = vpop.f32.mrb[0].mxu0 }
 0x104   :  { %v105_v6 = vadd.f32 %v129_v4, %v104_v5  ;;  %v142_v7 = vpop.f32.mrb[1].mxu0 }
 0x105   :  { %v107_v8 = vpop.f32.mrb[2].mxu0 }
 0x106   :  { %153 = vtanh.f32 %v105_v6  ;;  %v143_v9 = vpop.f32.mrb[3].mxu0 }
 0x110   :  { %v154_v10 = vpop.eup %153 }
 0x111   :  { %112 = vst.msk [vmem:[#allocation7] sm:$0x3] %vm111_vm2, %v154_v10 }
 0x112   :  { %210 = shalt.err (!%p207_p6)
}
 0x113   :  { %s211_s16 = scalar_lea.hbm %s303_s3, 32 }
 0x114   :  { %p212_p7 = scmp.ne.s32.totalorder %s303_s3, %s211_s16  ;;  %p215_p8 = scmp.lt.u32.totalorder %s211_s16, %s303_s3 }
 0x116   :  { %p217_p9 = pnand %p215_p8, %p212_p7 }
 0x118   :  { %220 = shalt.err (!%p217_p9)
}
 0x119   :  { %122 = dma.vmem_to_hbm [thread:$0]  %s120_s13, 32, %s303_s3, [#allocation4]  }
 0x11a   :  { %225 = dma.done.wait [#allocation4], 32  }
 0x11b   :  { %226 = vsyncadd [#allocation4], 4294967264 }
 0x11c   :  { %126 = vsyncpa [#allocation3], 1 }
 0x11d   :  { %127 = vsyncpa [#allocation6], 1 }
 0x11e   :  { %128 = vsyncpa [#allocation4], 1 }

</bundles_post_ra>
